<compile_context>
chip_gen: v6e
topology: v6e:2x2x1
jax: 0.10.0
libtpu: 0.0.40
codegen_flags: <defaults>
</compile_context>

<pallas_src>
import functools

import jax
import jax.numpy as jnp
from jax.experimental import pallas as pl
from jax.experimental.pallas import tpu as pltpu


_LANES = 128
_SUBLANES = 8
# Per-buffer VMEM budget for one tile of x / out. 4 buffers total
# (input + output, each double-buffered) stay well inside every chip's
# scoped-VMEM limit (incl. v5e's 16 MiB default and v7x's 64 MiB physical).
_TILE_BYTES_BUDGET = 2 * 1024 * 1024


def _cdiv(a: int, b: int) -> int:
    return -(-a // b)


def _round_up(a: int, m: int) -> int:
    return _cdiv(a, m) * m


def _drop_path_kernel(rand_ref, x_ref, o_ref, *, keep_prob):
    # rand_ref: SMEM f32[B]   (uniform [0, 1) per sample)
    # x_ref   : VMEM (1, r_tile, 128) tile of the current sample
    b = pl.program_id(0)
    r = rand_ref[b]                      # f32 scalar
    # torch: random_tensor = floor(keep_prob + rand)  ->  0.0 or 1.0
    mask = jnp.floor(keep_prob + r)      # f32
    scale = mask * (1.0 / keep_prob)     # f32
    # Multiply in f32 (bf16 * f32 promotes to f32); cast only on the store.
    o_ref[...] = (x_ref[...] * scale).astype(o_ref.dtype)


def drop_path_pallas(x, rand, drop_prob: float, training: bool):
    """Pallas DropPath.  x: (B, ...); rand: (B,) uniform in [0, 1)."""
    if drop_prob == 0.0 or not training:
        return x  # identity path, exactly like the PyTorch module

    keep_prob = 1.0 - drop_prob
    orig_shape = x.shape
    B = orig_shape[0]
    N = 1
    for d in orig_shape[1:]:
        N *= d

    # ---- lane/sublane-friendly re-layout: (B, R_pad, 128) -------------------
    itemsize = jnp.dtype(x.dtype).itemsize
    R = _cdiv(N, _LANES)                                   # 128-lane rows/sample
    max_rows = max(
        _SUBLANES,
        (_TILE_BYTES_BUDGET // (_LANES * itemsize)) // _SUBLANES * _SUBLANES,
    )
    num_tiles = _cdiv(R, max_rows)
    r_tile = _round_up(_cdiv(R, num_tiles), _SUBLANES)     # multiple of 8
    R_pad = num_tiles * r_tile
    N_pad = R_pad * _LANES

    x_flat = x.reshape(B, N)
    if N_pad != N:
        x_flat = jnp.pad(x_flat, ((0, 0), (0, N_pad - N)))
    x3 = x_flat.reshape(B, R_pad, _LANES)

    kernel = functools.partial(_drop_path_kernel, keep_prob=keep_prob)

    out3 = pl.pallas_call(
        kernel,
        out_shape=jax.ShapeDtypeStruct((B, R_pad, _LANES), x.dtype),
        grid=(B, num_tiles),
        in_specs=[
            pl.BlockSpec(memory_space=pltpu.SMEM),               # rand (B,) f32
            pl.BlockSpec((1, r_tile, _LANES), lambda b, t: (b, t, 0)),
        ],
        out_specs=pl.BlockSpec((1, r_tile, _LANES), lambda b, t: (b, t, 0)),
        input_output_aliases={1: 0},      # reuse x's (padded) HBM buffer
        compiler_params=pltpu.CompilerParams(
            dimension_semantics=("parallel", "parallel"),
            vmem_limit_bytes=32 * 1024 * 1024,
        ),
    )(rand.astype(jnp.float32), x3)

    out = out3.reshape(B, N_pad)
    if N_pad != N:
        out = out[:, :N]
    return out.reshape(orig_shape)


class DropPath:
    """Minimal JAX analogue of the PyTorch DropPath module."""

    def __init__(self, drop_prob: float = 0.0):
        self.drop_prob = drop_prob
        self.training = True

    def __call__(self, x, key):
        B = x.shape[0]
        rand = jax.random.uniform(key, (B,), dtype=jnp.float32)
        return drop_path_pallas(x, rand, self.drop_prob, self.training)


if __name__ == "__main__":
    key = jax.random.PRNGKey(0)
    kx, kr = jax.random.split(key)

    B, C, H, W = 2, 4, 16, 16
    x = jax.random.normal(kx, (B, C, H, W), dtype=jnp.float32)

    drop_prob = 0.3
    keep_prob = 1.0 - drop_prob
    rand = jax.random.uniform(kr, (B,), dtype=jnp.float32)

    # --- training path (mask + scale computed in the Pallas kernel) ---
    out_train = drop_path_pallas(x, rand, drop_prob, training=True)
    out_train = jax.block_until_ready(out_train)

    # reference (pure JAX, mirrors the torch implementation)
    mask = jnp.floor(keep_prob + rand).reshape(B, 1, 1, 1)
    ref = x / keep_prob * mask
    assert jnp.allclose(out_train, ref, atol=1e-6, rtol=1e-6)

    # --- eval / drop_prob==0 path is identity ---
    out_eval = drop_path_pallas(x, rand, drop_prob, training=False)
    out_eval = jax.block_until_ready(out_eval)
    assert jnp.allclose(out_eval, x)

    print("KERNEL_OK")
</pallas_src>

<mosaic_0001>
module attributes {stable_mosaic.version = 11 : i64} {
  func.func @_drop_path_kernel(%arg0: i32, %arg1: i32, %arg2: memref<2xf32, #tpu.memory_space<smem>>, %arg3: memref<1x8x128xf32, #tpu.memory_space<vmem>>, %arg4: memref<1x8x128xf32, #tpu.memory_space<vmem>>) attributes {dimension_semantics = [#tpu.dimension_semantics<parallel>, #tpu.dimension_semantics<parallel>], iteration_bounds = array<i64: 2, 1>, scalar_prefetch = 0 : i64, scratch_operands = 0 : i64, tpu.core_type = #tpu.core_type<tc>, window_params = [{transform_indices = @transform_0, window_bounds = array<i64: 2>}, {transform_indices = @transform_1, window_bounds = array<i64: 1, 8, 128>}, {transform_indices = @transform_2, window_bounds = array<i64: 1, 8, 128>}]} {
    %0 = arith.index_cast %arg0 : i32 to index
    %1 = memref.load %arg2[%0] : memref<2xf32, #tpu.memory_space<smem>>
    %cst = arith.constant 0.699999988 : f32
    %2 = arith.addf %cst, %1 : f32
    %3 = math.floor %2 : f32
    %cst_0 = arith.constant 1.42857146 : f32
    %4 = arith.mulf %3, %cst_0 : f32
    %c0 = arith.constant 0 : index
    %c0_1 = arith.constant 0 : index
    %c0_2 = arith.constant 0 : index
    %5 = vector.load %arg3[%c0, %c0_1, %c0_2] : memref<1x8x128xf32, #tpu.memory_space<vmem>>, vector<1x8x128xf32>
    %6 = vector.broadcast %4 : f32 to vector<1x8x128xf32>
    %7 = arith.mulf %5, %6 : vector<1x8x128xf32>
    %c0_3 = arith.constant 0 : index
    %c0_4 = arith.constant 0 : index
    %c0_5 = arith.constant 0 : index
    %8 = vector.load %arg4[%c0_3, %c0_4, %c0_5] : memref<1x8x128xf32, #tpu.memory_space<vmem>>, vector<1x8x128xf32>
    tpu.vector_store %arg4[%c0_3, %c0_4, %c0_5], %7 {strides = array<i32>} : memref<1x8x128xf32, #tpu.memory_space<vmem>>, vector<1x8x128xf32>,
    return
  }
  func.func @transform_0(%arg0: i32, %arg1: i32) -> i32 {
    %c0_i32 = arith.constant 0 : i32
    %c0_i32_0 = arith.constant 0 : i32
    return %c0_i32 : i32
  }
  func.func @transform_1(%arg0: i32, %arg1: i32) -> (i32, i32, i32) {
    %c0_i32 = arith.constant 0 : i32
    %c0_i32_0 = arith.constant 0 : i32
    return %arg0, %arg1, %c0_i32 : i32, i32, i32
  }
  func.func @transform_2(%arg0: i32, %arg1: i32) -> (i32, i32, i32) {
    %c0_i32 = arith.constant 0 : i32
    %c0_i32_0 = arith.constant 0 : i32
    return %arg0, %arg1, %c0_i32 : i32, i32, i32
  }
}

</mosaic_0001>

<bundles_post_ra>
// kernel: tpu_custom_call.1
= control target key start
LH: loop header
LB: loop body
LE: loop exit
PB: predicated region body
PF: predicated region fallthrough
CT: control target
= control target key end

     0   :  { %7 = vsyncpa [#allocation5], 0  ;;  %s702_s0 = inlined_call_operand.vmem [shape: f32[2], index: 0, kind: input, shape index: {}]   ;;  %s703_s1 = inlined_call_operand.hbm [shape: f32[2,8,128], index: 1, kind: input, shape index: {}, may-alias: {1,2}]   ;;  %s704_s2 = inlined_call_operand.hbm [shape: f32[2,8,128], index: 2, kind: output, shape index: {}, may-alias: {1,2}]  }
   0x1   :  { %8 = vsyncpa [#allocation3], 0 }
   0x2   :  { %10 = vsyncpa [#allocation3 + $0x1], 0 }
   0x3   :  { %11 = vsyncpa [#allocation4], 0 }
   0x4   :  { %13 = vsyncpa [#allocation4 + $0x1], 0  ;;  %s540_s9 = smov 0   ;;  %s542_s10 = smov 0  }
   0x5   :  { %s544_s11 = smov 0   ;;  %s546_s12 = smov 0  }
   0x6   :  { %s548_s13 = smov 0   ;;  %s550_s14 = smov 0  }
   0x7 LB: > { %s305_s15 = sadd.s32 4294967295, %s520_s14   ;;  %s306_s16 = sadd.s32 4294967294, %s520_s14   ;;  %s520_s14 = sphi %s550_s14, %s19_s14   ;;  %s516_s13 = sphi %s548_s13, %s721_s13   ;;  %s512_s12 = sphi %s546_s12, %s720_s12   ;;  %s508_s11 = sphi %s544_s11, %s719_s11   ;;  %s504_s10 = sphi %s542_s10, %s718_s10   ;;  %s500_s9 = sphi %s540_s9, %s717_s9  }
   0x8   : > { %p74_p0 = scmp.ne.s32.totalorder %s504_s10, %s500_s9  ;;  %p574_p1 = scmp.eq.s32.totalorder %s305_s15, 0 }
   0x9   : > { %p578_p2 = scmp.eq.s32.totalorder %s305_s15, 1  ;;  %p106_p3 = scmp.eq.s32.totalorder %s306_s16, 1 }
   0xa   : > { %p584_p4 = por %p574_p1, %p74_p0  ;;  %p307_p5 = scmp.ge.s32.totalorder %s520_s14, 1 }
   0xb   : > { %p589_p6 = por %p106_p3, %p74_p0  ;;  %p113_p7 = scmp.lt.s32.totalorder %s520_s14, 3 }
   0xc   : > { %s708_s19 = scalar_select %p584_p4, 1, 0 }
   0xd   : > { %s709_s20 = scalar_select %p589_p6, 1, 0 }
   0xe   : > { %s126_s23 = sshll.u32 %s702_s0, 4  ;;  %p597_p8 = pnand %p307_p5, %p113_p7  ;;  %s127_s23 = int_to_ptr.vmem [resolvable:$true] %s126_s23 }
   0xf   : > { %s31_s26 = sadd.s32 1, %s516_s13  ;;  %s61_s27 = sadd.s32 1, %s508_s11 }
  0x10   : > { %p328_p10 = pneg %p597_p8  ;;  %p33_p12 = scmp.ge.s32.totalorder %s31_s26, 2 }
  0x11   : > { %s393_s28 = scalar_lea.vmem %s127_s23, 16  ;;  %p401_p7 = scmp.lt.s32.totalorder %s127_s23, %s127_s23 }
  0x12   : > { %p606_p11 = pnand %p328_p10, %p574_p1  ;;  %p394_p13 = scmp.ne.s32.totalorder %s127_s23, %s393_s28 }
  0x13   : > { %p402_p6 = scmp.lt.s32.totalorder %s393_s28, %s393_s28 }
  0x14   : > { %p395_p0 = pneg %p606_p11 }
  0x15   : > { %p403_p9 = por %p402_p6, %p401_p7 }
  0x16   : > { %p396_p3 = pnand %p395_p0, %p394_p13 }
  0x18   : > { %p397_p5 = pneg %p396_p3 }
  0x1a   : > { %p404_p4 = pnand %p403_p9, %p397_p5 }
  0x1c   : > { %407 = shalt.err (!%p404_p4)
}
  0x1d   : > { %s522_s29 = smov [#allocation2]   ;;  %s723_s26 = smov (%p33_p12, %s31_s26), 0 }
  0x1e   : > { %331 = dma.vmem_to_smem (!%p606_p11), %s127_s23, 16, %s522_s29, [#allocation5]  }
  0x1f   : > { %p68_p10 = scmp.ne.s32.totalorder %s508_s11, %s504_s10  ;;  %p69_p6 = scmp.eq.s32.totalorder %s520_s14, 0 }
  0x20   : > { %s56_s30 = ssub.s32 %s516_s13, %s723_s26  ;;  %p341_p4 = scmp.lt.s32.totalorder %s520_s14, 2 }
  0x21   : > { %p59_p9 = scmp.eq.s32.totalorder %s56_s30, 0  ;;  %p70_p13 = por %p69_p6, %p68_p10 }
  0x22   : > { %p626_p0 = por %p578_p2, %p68_p10  ;;  %s137_s4 = sand.u32 1, %s508_s11  }
  0x23   : > { %s632_s5 = scalar_select %p59_p9, %s508_s11, %s61_s27  }
  0x24   : > { %s310_s6 = sshll.u32 %s137_s4, 3  ;;  %s311_s7 = sshll.u32 %s516_s13, 7 }
  0x25   : > { %s147_s16 = scalar_lea.hbm %s703_s1, %s311_s7  ;;  %s141_s21 = scalar_lea.vmem [#allocation6], %s310_s6 }
  0x26   : > { %s149_s22 = sshll.u32 %s141_s21, 4  ;;  %p638_p11 = pnand %p341_p4, %p70_p13  ;;  %s150_s22 = int_to_ptr.vmem [resolvable:$true] %s149_s22 }
  0x27   : > { %s138_s18 = scalar_lea.sflag [#allocation3], %s137_s4  ;;  %s421_s25 = scalar_lea.vmem %s150_s22, 128 }
  0x28   : > { %p410_p2 = pneg %p638_p11  ;;  %p422_p12 = scmp.ne.s32.totalorder %s150_s22, %s421_s25 }
  0x29   : > { %s523_s27 = smov [#allocation6]  }
  0x2a   : > { %p424_p3 = pnand %p422_p12, %p410_p2  ;;  %s426_s28 = sshll.u32 %s523_s27, 4  ;;  %s427_s28 = int_to_ptr.vmem [resolvable:$false] %s426_s28 }
  0x2b   : > { %s428_s29 = scalar_lea.vmem %s427_s28, 256  ;;  %p429_p7 = scmp.lt.s32.totalorder %s150_s22, %s427_s28 }
  0x2c   : > { %p425_p5 = pneg %p424_p3  ;;  %p430_p10 = scmp.lt.s32.totalorder %s428_s29, %s421_s25 }
  0x2e   : > { %p431_p6 = por %p430_p10, %p429_p7 }
  0x30   : > { %p432_p9 = pnand %p431_p6, %p425_p5 }
  0x32   : > { %435 = shalt.err (!%p432_p9)
}
  0x33   : > { %335 = dma.hbm_to_vmem [thread:$0]  (!%p638_p11), %s147_s16, 128, %s150_s22, %s138_s18  }
  0x34   : > { %158 = sbr.rel (%p597_p8) target bundleno = 91 (0x5b), region = 28 }
  0x39   : > { %487 = dma.done.wait (%p574_p1), [#allocation5], 16  }
  0x3a   : > { %489 = vsyncadd (%p574_p1), [#allocation5], 4294967280  ;;  %s653_s30 = sand.u32 1, %s504_s10   ;;  %p714_p4 = scmp.ne.s32.totalorder %s708_s19, 0 }
  0x3b   : > { %s314_s4 = sshll.u32 %s653_s30, 3  ;;  %s165_s6 = scalar_lea.sflag [#allocation3], %s653_s30 }
  0x3c   : > { %s168_s7 = scalar_lea.vmem [#allocation6], %s314_s4 }
  0x3d   : > { %491 = dma.done.wait (%p714_p4), %s165_s6, 128  }
  0x3e   : > { %493 = vsyncadd (%p714_p4), %s165_s6, 4294967168 }
  0x3f   : > { %173 = sfence }
  0x40   : > { %s190_s17 = sld [smem:[#allocation2 + %s512_s12]]  ;;  %s189_s15 = scalar_lea.vmem [#allocation7], %s314_s4  ;;  %v194_v0 = vld [vmem:[%s168_s7] sm:$0xff] }
  0x41   : > { %s213_s16 = sshll.u32 %s189_s15, 4  ;;  %s317_s22 = sshll.u32 %s512_s12, 7  ;;  %s214_s16 = int_to_ptr.vmem [resolvable:$true] %s213_s16 }
  0x42   : > { %s211_s19 = scalar_lea.hbm %s704_s2, %s317_s22  ;;  %s199_s25 = scalar_lea.sflag [#allocation4], %s653_s30 }
  0x43   : > { %s436_s27 = scalar_lea.vmem %s214_s16, 128  ;;  %s524_s28 = smov [#allocation7]  }
  0x44   : > { %p437_p1 = scmp.ne.s32.totalorder %s214_s16, %s436_s27  ;;  %s440_s29 = sshll.u32 %s524_s28, 4  ;;  %s441_s29 = int_to_ptr.vmem [resolvable:$false] %s440_s29 }
  0x45   : > { %s442_s4 = scalar_lea.vmem %s441_s29, 256  ;;  %p443_p11 = scmp.lt.s32.totalorder %s214_s16, %s441_s29 }
  0x46   : > { %s191_s24 = sadd.f32 0.7, %s190_s17  ;;  %p438_p8 = pnand %p437_p1, %p626_p0 }
  0x47   : > { %p444_p2 = scmp.lt.s32.totalorder %s442_s4, %s436_s27 }
  0x48   : > { %s192_s8 = sfloor.f32 %s191_s24  ;;  %p439_p13 = pneg %p438_p8 }
  0x49   : > { %s193_s21 = smul.f32 1.4285715, %s192_s8  ;;  %p445_p12 = por %p444_p2, %p443_p11 }
  0x4b   : > { %v195_v1 = vstv %s193_s21  ;;  %p446_p3 = pnand %p445_p12, %p439_p13 }
  0x4c   : > { %v196_v2 = vmul.f32 %v195_v1, %v194_v0 }
  0x4e   : > { %197 = vst [vmem:[%s189_s15] sm:$0xff] %v196_v2 }
  0x4f   : > { %449 = shalt.err (!%p446_p3)
}
  0x50   : > { %s450_s12 = scalar_lea.hbm %s211_s19, 128  ;;  %s454_s7 = scalar_lea.hbm %s704_s2, 256 }
  0x51   : > { %p451_p5 = scmp.ne.s32.totalorder %s211_s19, %s450_s12  ;;  %p455_p6 = scmp.lt.s32.totalorder %s211_s19, %s704_s2 }
  0x52   : > { %p456_p9 = scmp.lt.s32.totalorder %s454_s7, %s450_s12 }
  0x53   : > { %p452_p7 = pnand %p451_p5, %p626_p0 }
  0x54   : > { %p457_p4 = por %p456_p9, %p455_p6 }
  0x55   : > { %p453_p10 = pneg %p452_p7 }
  0x57   : > { %p458_p1 = pnand %p457_p4, %p453_p10 }
  0x59   : > { %461 = shalt.err (!%p458_p1)
}
  0x5a   : > { %326 = dma.vmem_to_hbm [thread:$0]  (%p626_p0), %s214_s16, 128, %s211_s19, %s199_s25  }
  0x5b PF: > { %s225_s8 = sand.u32 1, %s500_s9   ;;  %p715_p8 = scmp.ne.s32.totalorder %s709_s20, 0 }
  0x5c   : > { %p716_p13 = scmp.ge.s32.totalorder %s520_s14, 2  ;;  %s226_s15 = scalar_lea.sflag [#allocation4], %s225_s8 }
  0x5e   : > { %p337_p11 = pnand %p716_p13, %p715_p8 }
  0x60   : > { %p338_p2 = pneg %p337_p11 }
  0x62   : > { %495 = dma.done.wait (%p338_p2), %s226_s15, 128  }
  0x63   : > { %497 = vsyncadd (%p338_p2), %s226_s15, 4294967168  ;;  %s19_s14 = sadd.s32 1, %s520_s14   ;;  %s717_s9 = smov %s504_s10 }
  0x64   : > { %p16_p12 = scmp.ge.s32.totalorder %s19_s14, 4   ;;  %s718_s10 = smov %s508_s11 }
  0x65   : > { %s719_s11 = smov %s632_s5  ;;  %s720_s12 = smov %s516_s13 }
  0x66   : > { %s721_s13 = smov %s723_s26  ;;  %18 = sbr.rel (!%p16_p12) target bundleno = 7 (0x7), region = 78 }
  0x6b   :  { %231 = vsyncpa [#allocation3], 1 }
  0x6c   :  { %233 = vsyncpa [#allocation3 + $0x1], 1 }
  0x6d   :  { %234 = vsyncpa [#allocation4], 1 }
  0x6e   :  { %236 = vsyncpa [#allocation4 + $0x1], 1 }
  0x6f   :  { %237 = vsyncpa [#allocation5], 1 }
  0x70   :  { %239 = vsyncpa [#allocation5 + $0x1], 1 }

</bundles_post_ra>
